<compile_context>
chip_gen: v7x
topology: tpu7x:2x2x1
jax: 0.10.0
libtpu: 0.0.40
codegen_flags: <defaults>
</compile_context>

<pallas_src>
import math

import jax
import jax.numpy as jnp
from jax.experimental import pallas as pl
from jax.experimental.pallas import tpu as pltpu

NUM_LAYERS = 3
HIDDEN = 20
IN_DIM = 1
OUT_DIM = 3


def _round_up(x, m):
    return ((x + m - 1) // m) * m


def _make_sirnet_kernel(act_dtype, mxu_dtype):
    """Fused MLP forward on one batch tile; batch on the lane axis.

    t_ref:        (1, Bt)   f32 input times (transposed)
    w0_ref:       (H, 1)    f32;  b*_ref: (fan_out, 1) f32 column biases
    w1/w2_ref:    (H, H)    mxu_dtype;  w3_ref: (OUT, H) mxu_dtype
    o_ref:        (OUT, Bt) f32 -- lane-dense store
    """

    def kernel(t_ref, w0_ref, b0_ref, w1_ref, b1_ref, w2_ref, b2_ref,
               w3_ref, b3_ref, o_ref):
        t = t_ref[...]                                        # (1, Bt) f32

        # Layer 0: in_features == 1 -> VPU broadcast outer product (no MXU).
        z = w0_ref[...] * t + b0_ref[...]                     # (H, Bt) f32
        h = jnp.tanh(z.astype(act_dtype))                     # EUP tanh

        # Hidden layers: (H, H) @ (H, Bt) on the MXU, f32 accumulation.
        for w_ref, b_ref in ((w1_ref, b1_ref), (w2_ref, b2_ref)):
            z = jnp.dot(w_ref[...], h.astype(mxu_dtype),
                        preferred_element_type=jnp.float32) + b_ref[...]
            h = jnp.tanh(z.astype(act_dtype))

        # Output projection (OUT, H) @ (H, Bt).
        # Kept on the MXU: moving it to a VPU-mul + XLU sublane-reduce only pays
        # off if a bundle dump shows the MXU-push slot is the binding one.
        y = jnp.dot(w3_ref[...], h.astype(mxu_dtype),
                    preferred_element_type=jnp.float32) + b3_ref[...]

        # sigmoid(y) == 0.5 * tanh(0.5 * y) + 0.5  -> one EUP op, lane-dense store.
        o_ref[...] = (0.5 * jnp.tanh(0.5 * y) + 0.5).astype(o_ref.dtype)

    return kernel


def _device_kind():
    try:
        return jax.devices()[0].device_kind.lower()
    except Exception:
        return ""


def _default_dtypes():
    kind = _device_kind()
    if ("v6" in kind) or ("v7" in kind) or ("7x" in kind):
        # bf16-native VPU / EUP / MXU.
        return jnp.bfloat16, jnp.bfloat16
    # v5e & older: no bf16 VPU/EUP -> f32 activations, bf16 MXU operands only.
    return jnp.float32, jnp.bfloat16


def sirnet_forward(t, params, *, btile=8192, act_dtype=None, mxu_dtype=None,
                   transposed_output=False):
    """SIRNet forward. t: (B, 1) f32 -> (B, 3) f32 (or (3, B) if transposed_output)."""
    if act_dtype is None or mxu_dtype is None:
        d_act, d_mxu = _default_dtypes()
        act_dtype = d_act if act_dtype is None else act_dtype
        mxu_dtype = d_mxu if mxu_dtype is None else mxu_dtype

    (w0, b0), (w1, b1), (w2, b2), (w3, b3) = params
    B = t.shape[0]
    assert t.shape == (B, IN_DIM)
    assert btile >= 128 and btile % 128 == 0, "btile must be a multiple of 128"
    # Keep btile <= 32768 (or raise vmem_limit_bytes) for v5e's 16 MiB scoped VMEM.

    kind = _device_kind()
    is_v7 = ("v7" in kind) or ("7x" in kind)
    num_tc = 2 if is_v7 else 1

    # Static batch tile: the grid, not the tile shape, tracks B.  On v7x only,
    # shrink the tile if needed so both TensorCores get at least one tile.
    btile_eff = btile
    if num_tc > 1:
        per_core = _round_up(-(-B // num_tc), 128)
        btile_eff = max(128, min(btile, per_core))

    grid_b = pl.cdiv(B, btile_eff)
    b_pad = grid_b * btile_eff

    # Batch onto the lane axis: (B, 1) -> (1, b_pad), zero-padded tail
    # (padded columns compute sigmoid(net(0)) and are discarded).
    t_t = jnp.pad(t.astype(jnp.float32).reshape(1, B), ((0, 0), (0, b_pad - B)))

    # MXU operands in mxu_dtype (bf16 halves their resident VMEM footprint too).
    w1c, w2c, w3c = (w.astype(mxu_dtype) for w in (w1, w2, w3))
    operands = (t_t, w0, b0, w1c, b1, w2c, b2, w3c, b3)

    const_spec = lambda a: pl.BlockSpec(a.shape, lambda i: (0, 0))

    flops_per_row = (2 * HIDDEN                                   # layer 0
                     + 2 * (2 * HIDDEN * HIDDEN + HIDDEN)         # 2 hidden layers
                     + 2 * HIDDEN * OUT_DIM + OUT_DIM)            # output layer
    weight_bytes = sum(int(a.size) * a.dtype.itemsize for a in operands[1:])
    cost = pl.CostEstimate(
        flops=int(b_pad) * flops_per_row,
        transcendentals=int(b_pad) * (NUM_LAYERS * HIDDEN + OUT_DIM),
        bytes_accessed=int(b_pad) * 4 * (IN_DIM + OUT_DIM) + weight_bytes)

    if is_v7 and grid_b >= 2:
        # v7x: genuinely shard the batch grid across the two TensorCores.
        semantics = (pltpu.CORE_PARALLEL,)
    else:
        semantics = (pltpu.PARALLEL,)

    out_t = pl.pallas_call(
        _make_sirnet_kernel(act_dtype, mxu_dtype),
        out_shape=jax.ShapeDtypeStruct((OUT_DIM, b_pad), jnp.float32),
        grid_spec=pltpu.PrefetchScalarGridSpec(
            num_scalar_prefetch=0,
            grid=(grid_b,),
            in_specs=[
                pl.BlockSpec((1, btile_eff), lambda i: (0, i)),   # t (streamed)
                const_spec(w0), const_spec(b0),                   # VMEM-resident
                const_spec(w1c), const_spec(b1),
                const_spec(w2c), const_spec(b2),
                const_spec(w3c), const_spec(b3),
            ],
            out_specs=pl.BlockSpec((OUT_DIM, btile_eff), lambda i: (0, i)),
        ),
        compiler_params=pltpu.CompilerParams(dimension_semantics=semantics),
        cost_estimate=cost,
    )(*operands)

    out_t = out_t[:, :B]            # slice padded tail BEFORE any transpose
    return out_t if transposed_output else out_t.T


def xavier_uniform(key, fan_out, fan_in, gain):
    # PyTorch weight layout: (out_features, in_features).
    limit = gain * math.sqrt(6.0 / (fan_in + fan_out))
    return jax.random.uniform(key, (fan_out, fan_in),
                              minval=-limit, maxval=limit, dtype=jnp.float32)


def init_params(seed=42, hidden=HIDDEN):
    # Re-creates init_xavier(): xavier_uniform with tanh gain (5/3) on weights,
    # biases filled with 0.01.  Uses the JAX PRNG (same distribution/shapes,
    # not bit-identical to torch.manual_seed(42)).
    gain = 5.0 / 3.0  # nn.init.calculate_gain('tanh')
    key = jax.random.PRNGKey(seed)
    keys = jax.random.split(key, NUM_LAYERS + 1)

    dims = [IN_DIM] + [hidden] * NUM_LAYERS + [OUT_DIM]
    params = []
    for i in range(NUM_LAYERS + 1):
        fan_in, fan_out = dims[i], dims[i + 1]
        w = xavier_uniform(keys[i], fan_out, fan_in, gain)      # (out, in)
        b = jnp.full((fan_out, 1), 0.01, dtype=jnp.float32)     # column bias
        params.append((w, b))
    return params


def sirnet_reference(t, params):
    """Pure-JAX f32 reference in the standard (B, feat) layout."""
    x = t
    for i, (w, b) in enumerate(params):
        x = x @ w.T + b.reshape(1, -1)
        if i < len(params) - 1:
            x = jnp.tanh(x)
    return jax.nn.sigmoid(x)


if __name__ == "__main__":
    params = init_params(seed=42)

    # (1) Strict f32 parity at a small, module-consistent shape: t of shape (8, 1).
    B = 8
    t = jax.random.uniform(jax.random.PRNGKey(0), (B, IN_DIM),
                           dtype=jnp.float32) * 10.0
    out = jax.block_until_ready(
        sirnet_forward(t, params, btile=256,
                       act_dtype=jnp.float32, mxu_dtype=jnp.float32))
    ref = sirnet_reference(t, params)
    assert out.shape == (B, OUT_DIM)
    assert jnp.allclose(out, ref, atol=1e-5, rtol=1e-5), "f32 mismatch vs reference"

    # (2) Device-default dtype policy (bf16 MXU operands everywhere; bf16 EUP on
    #     v6e/v7x), multi-step batch grid with a padded final tile.
    B2 = 300
    t2 = jax.random.uniform(jax.random.PRNGKey(1), (B2, IN_DIM),
                            dtype=jnp.float32) * 10.0
    out2 = jax.block_until_ready(sirnet_forward(t2, params, btile=128))
    ref2 = sirnet_reference(t2, params)
    assert out2.shape == (B2, OUT_DIM)
    assert jnp.allclose(out2, ref2, atol=3e-2, rtol=0.0), "bf16 mismatch vs reference"

    print("KERNEL_OK")
</pallas_src>

<mosaic_0001>
module attributes {stable_mosaic.version = 11 : i64} {
  func.func @kernel(%arg0: i32, %arg1: memref<1x256xf32, #tpu.memory_space<vmem>>, %arg2: memref<20x1xf32, #tpu.memory_space<vmem>>, %arg3: memref<20x1xf32, #tpu.memory_space<vmem>>, %arg4: memref<20x20xf32, #tpu.memory_space<vmem>>, %arg5: memref<20x1xf32, #tpu.memory_space<vmem>>, %arg6: memref<20x20xf32, #tpu.memory_space<vmem>>, %arg7: memref<20x1xf32, #tpu.memory_space<vmem>>, %arg8: memref<3x20xf32, #tpu.memory_space<vmem>>, %arg9: memref<3x1xf32, #tpu.memory_space<vmem>>, %arg10: memref<3x256xf32, #tpu.memory_space<vmem>>) attributes {dimension_semantics = [#tpu.dimension_semantics<parallel>], iteration_bounds = array<i64: 1>, scalar_prefetch = 0 : i64, scratch_operands = 0 : i64, tpu.core_type = #tpu.core_type<tc>, window_params = [{transform_indices = @transform_0, window_bounds = array<i64: 1, 256>}, {pipeline_mode = #tpu.pipeline_mode<synchronous>, transform_indices = @transform_1, window_bounds = array<i64: 20, 1>}, {pipeline_mode = #tpu.pipeline_mode<synchronous>, transform_indices = @transform_2, window_bounds = array<i64: 20, 1>}, {pipeline_mode = #tpu.pipeline_mode<synchronous>, transform_indices = @transform_3, window_bounds = array<i64: 20, 20>}, {pipeline_mode = #tpu.pipeline_mode<synchronous>, transform_indices = @transform_4, window_bounds = array<i64: 20, 1>}, {pipeline_mode = #tpu.pipeline_mode<synchronous>, transform_indices = @transform_5, window_bounds = array<i64: 20, 20>}, {pipeline_mode = #tpu.pipeline_mode<synchronous>, transform_indices = @transform_6, window_bounds = array<i64: 20, 1>}, {pipeline_mode = #tpu.pipeline_mode<synchronous>, transform_indices = @transform_7, window_bounds = array<i64: 3, 20>}, {pipeline_mode = #tpu.pipeline_mode<synchronous>, transform_indices = @transform_8, window_bounds = array<i64: 3, 1>}, {transform_indices = @transform_9, window_bounds = array<i64: 3, 256>}]} {
    %c0 = arith.constant 0 : index
    %c0_0 = arith.constant 0 : index
    %0 = vector.load %arg1[%c0, %c0_0] : memref<1x256xf32, #tpu.memory_space<vmem>>, vector<1x256xf32>
    %c0_1 = arith.constant 0 : index
    %c0_2 = arith.constant 0 : index
    %1 = vector.load %arg2[%c0_1, %c0_2] : memref<20x1xf32, #tpu.memory_space<vmem>>, vector<20x1xf32>
    %2 = vector.broadcast %1 : vector<20x1xf32> to vector<20x256xf32>
    %3 = vector.broadcast %0 : vector<1x256xf32> to vector<20x256xf32>
    %4 = arith.mulf %2, %3 : vector<20x256xf32>
    %c0_3 = arith.constant 0 : index
    %c0_4 = arith.constant 0 : index
    %5 = vector.load %arg3[%c0_3, %c0_4] : memref<20x1xf32, #tpu.memory_space<vmem>>, vector<20x1xf32>
    %6 = vector.broadcast %5 : vector<20x1xf32> to vector<20x256xf32>
    %7 = arith.addf %4, %6 : vector<20x256xf32>
    %8 = math.tanh %7 : vector<20x256xf32>
    %c0_5 = arith.constant 0 : index
    %c0_6 = arith.constant 0 : index
    %9 = vector.load %arg4[%c0_5, %c0_6] : memref<20x20xf32, #tpu.memory_space<vmem>>, vector<20x20xf32>
    %cst = arith.constant dense<0.000000e+00> : vector<20x256xf32>
    %10 = tpu.matmul %9, %8, %cst {dimension_numbers = #tpu.dot_dimension_numbers<[1], [0], [0], [1], [0, 0, 1, 1], [], []>} : vector<20x20xf32>, vector<20x256xf32>, vector<20x256xf32> -> vector<20x256xf32>
    %c0_7 = arith.constant 0 : index
    %c0_8 = arith.constant 0 : index
    %11 = vector.load %arg5[%c0_7, %c0_8] : memref<20x1xf32, #tpu.memory_space<vmem>>, vector<20x1xf32>
    %12 = vector.broadcast %11 : vector<20x1xf32> to vector<20x256xf32>
    %13 = arith.addf %10, %12 : vector<20x256xf32>
    %14 = math.tanh %13 : vector<20x256xf32>
    %c0_9 = arith.constant 0 : index
    %c0_10 = arith.constant 0 : index
    %15 = vector.load %arg6[%c0_9, %c0_10] : memref<20x20xf32, #tpu.memory_space<vmem>>, vector<20x20xf32>
    %cst_11 = arith.constant dense<0.000000e+00> : vector<20x256xf32>
    %16 = tpu.matmul %15, %14, %cst_11 {dimension_numbers = #tpu.dot_dimension_numbers<[1], [0], [0], [1], [0, 0, 1, 1], [], []>} : vector<20x20xf32>, vector<20x256xf32>, vector<20x256xf32> -> vector<20x256xf32>
    %c0_12 = arith.constant 0 : index
    %c0_13 = arith.constant 0 : index
    %17 = vector.load %arg7[%c0_12, %c0_13] : memref<20x1xf32, #tpu.memory_space<vmem>>, vector<20x1xf32>
    %18 = vector.broadcast %17 : vector<20x1xf32> to vector<20x256xf32>
    %19 = arith.addf %16, %18 : vector<20x256xf32>
    %20 = math.tanh %19 : vector<20x256xf32>
    %c0_14 = arith.constant 0 : index
    %c0_15 = arith.constant 0 : index
    %21 = vector.load %arg8[%c0_14, %c0_15] : memref<3x20xf32, #tpu.memory_space<vmem>>, vector<3x20xf32>
    %cst_16 = arith.constant dense<0.000000e+00> : vector<3x256xf32>
    %22 = tpu.matmul %21, %20, %cst_16 {dimension_numbers = #tpu.dot_dimension_numbers<[1], [0], [0], [1], [0, 0, 1, 1], [], []>} : vector<3x20xf32>, vector<20x256xf32>, vector<3x256xf32> -> vector<3x256xf32>
    %c0_17 = arith.constant 0 : index
    %c0_18 = arith.constant 0 : index
    %23 = vector.load %arg9[%c0_17, %c0_18] : memref<3x1xf32, #tpu.memory_space<vmem>>, vector<3x1xf32>
    %24 = vector.broadcast %23 : vector<3x1xf32> to vector<3x256xf32>
    %25 = arith.addf %22, %24 : vector<3x256xf32>
    %cst_19 = arith.constant 5.000000e-01 : f32
    %26 = vector.broadcast %cst_19 : f32 to vector<3x256xf32>
    %27 = arith.mulf %26, %25 : vector<3x256xf32>
    %28 = math.tanh %27 : vector<3x256xf32>
    %cst_20 = arith.constant 5.000000e-01 : f32
    %29 = vector.broadcast %cst_20 : f32 to vector<3x256xf32>
    %30 = arith.mulf %29, %28 : vector<3x256xf32>
    %cst_21 = arith.constant 5.000000e-01 : f32
    %31 = vector.broadcast %cst_21 : f32 to vector<3x256xf32>
    %32 = arith.addf %30, %31 : vector<3x256xf32>
    %c0_22 = arith.constant 0 : index
    %c0_23 = arith.constant 0 : index
    %33 = vector.load %arg10[%c0_22, %c0_23] : memref<3x256xf32, #tpu.memory_space<vmem>>, vector<3x256xf32>
    tpu.vector_store %arg10[%c0_22, %c0_23], %32 {strides = array<i32>} : memref<3x256xf32, #tpu.memory_space<vmem>>, vector<3x256xf32>,
    return
  }
  func.func @transform_0(%arg0: i32) -> (i32, i32) {
    %c0_i32 = arith.constant 0 : i32
    %c0_i32_0 = arith.constant 0 : i32
    return %c0_i32, %arg0 : i32, i32
  }
  func.func @transform_1(%arg0: i32) -> (i32, i32) {
    %c0_i32 = arith.constant 0 : i32
    %c0_i32_0 = arith.constant 0 : i32
    %c0_i32_1 = arith.constant 0 : i32
    return %c0_i32, %c0_i32_0 : i32, i32
  }
  func.func @transform_2(%arg0: i32) -> (i32, i32) {
    %c0_i32 = arith.constant 0 : i32
    %c0_i32_0 = arith.constant 0 : i32
    %c0_i32_1 = arith.constant 0 : i32
    return %c0_i32, %c0_i32_0 : i32, i32
  }
  func.func @transform_3(%arg0: i32) -> (i32, i32) {
    %c0_i32 = arith.constant 0 : i32
    %c0_i32_0 = arith.constant 0 : i32
    %c0_i32_1 = arith.constant 0 : i32
    return %c0_i32, %c0_i32_0 : i32, i32
  }
  func.func @transform_4(%arg0: i32) -> (i32, i32) {
    %c0_i32 = arith.constant 0 : i32
    %c0_i32_0 = arith.constant 0 : i32
    %c0_i32_1 = arith.constant 0 : i32
    return %c0_i32, %c0_i32_0 : i32, i32
  }
  func.func @transform_5(%arg0: i32) -> (i32, i32) {
    %c0_i32 = arith.constant 0 : i32
    %c0_i32_0 = arith.constant 0 : i32
    %c0_i32_1 = arith.constant 0 : i32
    return %c0_i32, %c0_i32_0 : i32, i32
  }
  func.func @transform_6(%arg0: i32) -> (i32, i32) {
    %c0_i32 = arith.constant 0 : i32
    %c0_i32_0 = arith.constant 0 : i32
    %c0_i32_1 = arith.constant 0 : i32
    return %c0_i32, %c0_i32_0 : i32, i32
  }
  func.func @transform_7(%arg0: i32) -> (i32, i32) {
    %c0_i32 = arith.constant 0 : i32
    %c0_i32_0 = arith.constant 0 : i32
    %c0_i32_1 = arith.constant 0 : i32
    return %c0_i32, %c0_i32_0 : i32, i32
  }
  func.func @transform_8(%arg0: i32) -> (i32, i32) {
    %c0_i32 = arith.constant 0 : i32
    %c0_i32_0 = arith.constant 0 : i32
    %c0_i32_1 = arith.constant 0 : i32
    return %c0_i32, %c0_i32_0 : i32, i32
  }
  func.func @transform_9(%arg0: i32) -> (i32, i32) {
    %c0_i32 = arith.constant 0 : i32
    %c0_i32_0 = arith.constant 0 : i32
    return %c0_i32, %arg0 : i32, i32
  }
}

</mosaic_0001>

<bundles_post_ra>
// kernel: tpu_custom_call.1
= control target key start
LH: loop header
LB: loop body
LE: loop exit
PB: predicated region body
PF: predicated region fallthrough
CT: control target
= control target key end

     0   :  { %v559_v2 = vmov 0   ;;  %s707_s0 = inlined_call_operand.vmem [shape: f32[1,256], index: 0, kind: input, shape index: {}]   ;;  %s708_s1 = inlined_call_operand.vmem [shape: f32[20,1], index: 1, kind: input, shape index: {}]   ;;  %s709_s2 = inlined_call_operand.vmem [shape: f32[20,1], index: 2, kind: input, shape index: {}]   ;;  %s710_s3 = inlined_call_operand.vmem [shape: f32[20,20], index: 3, kind: input, shape index: {}]   ;;  %s711_s4 = inlined_call_operand.vmem [shape: f32[20,1], index: 4, kind: input, shape index: {}]   ;;  %s712_s5 = inlined_call_operand.vmem [shape: f32[20,20], index: 5, kind: input, shape index: {}]   ;;  %s713_s6 = inlined_call_operand.vmem [shape: f32[20,1], index: 6, kind: input, shape index: {}]   ;;  %s714_s7 = inlined_call_operand.vmem [shape: f32[3,20], index: 7, kind: input, shape index: {}]   ;;  %s715_s8 = inlined_call_operand.vmem [shape: f32[3,1], index: 8, kind: input, shape index: {}]   ;;  %s716_s9 = inlined_call_operand.hbm [shape: f32[3,256], index: 9, kind: output, shape index: {}]  }
   0x1   :  { %v69_v0 = vld [vmem:[%s709_s2] sm:$0xff]  ;;  %494 = vset.pattern.permute.xlu1 %v559_v2  ;;  %493 = vset.pattern.permute.xlu0 %v559_v2  ;;  %v70_v3 = vld [vmem:[%s709_s2 + $0x8] sm:$0xff] }
   0x2   :  { %v34_v1 = vld [vmem:[%s708_s1] sm:$0xff]  ;;  %74 = vperm.xlu1 %494, %v69_v0   ;;  %v35_v4 = vld [vmem:[%s708_s1 + $0x8] sm:$0xff] }
   0x3   :  { %39 = vperm.xlu0 %493, %v34_v1  }
   0x4   :  { %14 = vsyncpa [#allocation3], 0  ;;  %v71_v5 = vld [vmem:[%s709_s2 + $0x10] sm:$0xf]  ;;  %v103_v7 = vld [vmem:[%s711_s4 + $0x8] sm:$0xff]  ;;  %v560_v14 = vmov 0.0   ;;  %v53_v15 = vlaneseq }
   0x5   :  { %v36_v6 = vld [vmem:[%s708_s1 + $0x10] sm:$0xf]  ;;  %v102_v8 = vld [vmem:[%s711_s4] sm:$0xff]  ;;  %v230_v12 = vld [vmem:[%s713_s6 + $0x8] sm:$0xff]  ;;  %201 = vmatprep.mubr.f32.mxu0 %v560_v14  ;;  %326 = vmatprep.mubr.f32.mxu1 %v560_v14  ;;  %vm130_vm0 = vcmask 1043456   ;;  %vm120_vm1 = vcmask 162816  }
   0x6   :  { %79 = vperm.xlu1 %494, %v70_v3   ;;  %v229_v9 = vld [vmem:[%s713_s6] sm:$0xff]  ;;  %v104_v10 = vld [vmem:[%s711_s4 + $0x10] sm:$0xf]  ;;  %v54_v16 = vshrl.u32 %v53_v15, 7  ;;  %v100_v49 = vld [vmem:[%s710_s3 + $0x8] sm:$0xff] }
   0x7   :  { %44 = vperm.xlu0 %493, %v35_v4   ;;  %v231_v11 = vld [vmem:[%s713_s6 + $0x10] sm:$0xf]  ;;  %v352_v13 = vld [vmem:[%s715_s8] sm:$0x7] }
   0x8   :  { %v55_v17 = vsub.s32 0, %v54_v16  ;;  %v59_v18 = vsub.s32 1, %v54_v16  ;;  %v33_v19 = vld [vmem:[%s707_s0] sm:$0x3]  ;;  %v101_v50 = vld [vmem:[%s710_s3 + $0x10] sm:$0xf] }
   0x9   :  { %v99_v47 = vld [vmem:[%s710_s3] sm:$0xff] }
   0xa   :  { %84 = vperm.xlu1 %494, %v71_v5   ;;  %v56_v20 = vrot.slane %v33_v19, %v55_v17  ;;  %v60_v21 = vrot.slane %v33_v19, %v59_v18 }
   0xb   :  { %49 = vperm.xlu0 %493, %v36_v6  }
   0xe   :  { %112 = vperm.xlu1 %494, %v103_v7  }
   0xf   :  { %107 = vperm.xlu0 %493, %v102_v8  }
  0x12   :  { %234 = vperm.xlu1 %494, %v229_v9   ;;  %v226_v9 = vld [vmem:[%s712_s5] sm:$0xff] }
  0x13   :  { %117 = vperm.xlu0 %493, %v104_v10  }
  0x16   :  { %244 = vperm.xlu1 %494, %v231_v11   ;;  %v227_v11 = vld [vmem:[%s712_s5 + $0x8] sm:$0xff] }
  0x17   :  { %239 = vperm.xlu0 %493, %v230_v12   ;;  %v228_v12 = vld [vmem:[%s712_s5 + $0x10] sm:$0xf] }
  0x1b   :  { %355 = vperm.xlu0 %493, %v352_v13  }
  0x81   :  { %v75_v22 = vpop.permute.xlu1 %74 }
  0x82   :  { %v40_v23 = vpop.permute.xlu0 %39 }
  0x83   :  { %v63_v24 = vmul.f32 %v56_v20, %v40_v23  ;;  %v64_v25 = vmul.f32 %v60_v21, %v40_v23 }
  0x85   :  { %v87_v26 = vadd.f32 %v75_v22, %v63_v24  ;;  %v88_v27 = vadd.f32 %v75_v22, %v64_v25  ;;  %v80_v28 = vpop.permute.xlu1 %79 }
  0x86   :  { %v45_v29 = vpop.permute.xlu0 %44 }
  0x87   :  { %v65_v30 = vmul.f32 %v56_v20, %v45_v29  ;;  %v66_v31 = vmul.f32 %v60_v21, %v45_v29  ;;  %495 = vtanh.f32 %v87_v26 }
  0x88   :  { %497 = vtanh.f32 %v88_v27 }
  0x89   :  { %v89_v32 = vadd.f32 %v80_v28, %v65_v30  ;;  %v90_v33 = vadd.f32 %v80_v28, %v66_v31  ;;  %v85_v37 = vpop.permute.xlu1 %84 }
  0x8a   :  { %v50_v34 = vpop.permute.xlu0 %49 }
  0x8b   :  { %499 = vtanh.f32 %v89_v32  ;;  %v67_v35 = vmul.f32 %v56_v20, %v50_v34  ;;  %v68_v36 = vmul.f32 %v60_v21, %v50_v34 }
  0x8c   :  { %501 = vtanh.f32 %v90_v33 }
  0x8d   :  { %v92_v38 = vadd.f32 %v85_v37, %v68_v36  ;;  %v91_v39 = vadd.f32 %v85_v37, %v67_v35  ;;  %v113_v56 = vpop.permute.xlu1 %112  ;;  %v351_v35 = vld [vmem:[%s714_s7] sm:$0x7]  ;;  %s561_s7 = smov [#allocation2]  }
  0x8e   :  { %v108_v51 = vpop.permute.xlu0 %107  ;;  %s457_s22 = sshll.u32 %s561_s7, 4  ;;  %s458_s22 = int_to_ptr.vmem [resolvable:$true] %s457_s22 }
  0x8f   :  { %503 = vtanh.f32 %v92_v38  ;;  %s535_s23 = scalar_lea.vmem %s458_s22, 128  ;;  %p540_p1 = scmp.lt.s32.totalorder %s458_s22, %s458_s22 }
  0x90   :  { %505 = vtanh.f32 %v91_v39  ;;  %p536_p0 = scmp.ne.s32.totalorder %s458_s22, %s535_s23  ;;  %p541_p2 = scmp.lt.s32.totalorder %s535_s23, %s535_s23 }
  0x91   :  { %v496_v40 = vpop.eup %495  ;;  %v235_v13 = vpop.permute.xlu1 %234 }
  0x92   :  { %v498_v41 = vpop.eup %497  ;;  %v118_v62 = vpop.permute.xlu0 %117  ;;  %p542_p3 = por %p541_p2, %p540_p1 }
  0x94   :  { %p543_p4 = pnand %p542_p3, %p536_p0 }
  0x95   :  { %v500_v42 = vpop.eup %499  ;;  %v245_v24 = vpop.permute.xlu1 %244 }
  0x96   :  { %v502_v43 = vpop.eup %501  ;;  %v480_v44 = vpack.c.bf16 %v500_v42, %v496_v40  ;;  %v240_v19 = vpop.permute.xlu0 %239 }
  0x97   :  { %v478_v45 = vpack.c.bf16 %v502_v43, %v498_v41 }
  0x99   :  { %479 = vmatprep.subr.bf16.mxu0 %v478_v45  ;;  %v504_v46 = vpop.eup %503 }
  0x9a   :  { %481 = vmatpush1.bf16.msra.mxu0 %v480_v44  ;;  %v506_v48 = vpop.eup %505  ;;  %v356_v37 = vpop.permute.xlu0 %355 }
  0x9b   :  { %465 = vmatprep.subr.msk.mxu0 %vm130_vm0, %v504_v46 }
  0x9e   :  { %466 = vmatpush1.msk.msra.mxu0 %vm130_vm0, %v506_v48 }
  0x9f   :  { %467 = vmatmul.mubr.msk.f32.vlgmr.msra.gmra.mrb[0].mxu0 %vm120_vm1, %v99_v47 }
  0xa0   :  { %207 = vmatprep.mubr.f32.mxu0 %v560_v14 }
  0xa3   :  { %468 = vmatmul.mubr.msk.f32.gmra.mrb[2].mxu0 %vm120_vm1, %v100_v49 }
  0xa4   :  { %213 = vmatprep.mubr.f32.mxu0 %v560_v14 }
  0xa7   :  { %469 = vmatmul.mubr.msk.f32.gmra.mrb[4].mxu0 %vm120_vm1, %v101_v50 }
  0xa8   :  { %431 = vmatprep.mubr.f32.mxu0 %v560_v14 }
 0x172   :  { %v203_v52 = vpop.f32.mrb[0].mxu0 }
 0x173   :  { %v204_v53 = vadd.f32 %v203_v52, %v108_v51  ;;  %v205_v54 = vpop.f32.mrb[1].mxu0 }
 0x174   :  { %v206_v55 = vadd.f32 %v205_v54, %v108_v51 }
 0x175   :  { %507 = vtanh.f32 %v204_v53 }
 0x176   :  { %v209_v57 = vpop.f32.mrb[2].mxu0  ;;  %509 = vtanh.f32 %v206_v55 }
 0x177   :  { %v210_v58 = vadd.f32 %v209_v57, %v113_v56  ;;  %v211_v59 = vpop.f32.mrb[3].mxu0 }
 0x178   :  { %v212_v60 = vadd.f32 %v211_v59, %v113_v56 }
 0x179   :  { %511 = vtanh.f32 %v210_v58 }
 0x17a   :  { %513 = vtanh.f32 %v212_v60  ;;  %v215_v61 = vpop.f32.mrb[4].mxu0 }
 0x17b   :  { %v217_v63 = vpop.f32.mrb[5].mxu0  ;;  %v216_v1 = vadd.f32 %v215_v61, %v118_v62 }
 0x17c   :  { %v218_v0 = vadd.f32 %v217_v63, %v118_v62 }
 0x17e   :  { %515 = vtanh.f32 %v218_v0 }
 0x17f   :  { %v508_v2 = vpop.eup %507  ;;  %517 = vtanh.f32 %v216_v1 }
 0x180   :  { %v510_v3 = vpop.eup %509 }
 0x183   :  { %v512_v4 = vpop.eup %511 }
 0x184   :  { %v514_v5 = vpop.eup %513  ;;  %v484_v6 = vpack.c.bf16 %v512_v4, %v508_v2 }
 0x185   :  { %v482_v7 = vpack.c.bf16 %v514_v5, %v510_v3 }
 0x187   :  { %483 = vmatprep.subr.bf16.mxu1 %v482_v7 }
 0x188   :  { %v516_v8 = vpop.eup %515  ;;  %485 = vmatpush1.bf16.msra.mxu1 %v484_v6 }
 0x189   :  { %470 = vmatprep.subr.msk.mxu1 %vm130_vm0, %v516_v8  ;;  %v518_v10 = vpop.eup %517 }
 0x18c   :  { %471 = vmatpush1.msk.msra.mxu1 %vm130_vm0, %v518_v10 }
 0x18d   :  { %472 = vmatmul.mubr.msk.f32.vlgmr.msra.gmra.mrb[0].mxu1 %vm120_vm1, %v226_v9 }
 0x18e   :  { %332 = vmatprep.mubr.f32.mxu1 %v560_v14 }
 0x191   :  { %473 = vmatmul.mubr.msk.f32.gmra.mrb[2].mxu1 %vm120_vm1, %v227_v11 }
 0x192   :  { %338 = vmatprep.mubr.f32.mxu1 %v560_v14 }
 0x195   :  { %474 = vmatmul.mubr.msk.f32.gmra.mrb[4].mxu1 %vm120_vm1, %v228_v12 }
 0x260   :  { %v328_v15 = vpop.f32.mrb[0].mxu1 }
 0x261   :  { %v329_v16 = vadd.f32 %v328_v15, %v235_v13  ;;  %v330_v17 = vpop.f32.mrb[1].mxu1 }
 0x262   :  { %v331_v18 = vadd.f32 %v330_v17, %v235_v13 }
 0x263   :  { %519 = vtanh.f32 %v329_v16 }
 0x264   :  { %v334_v20 = vpop.f32.mrb[2].mxu1  ;;  %521 = vtanh.f32 %v331_v18 }
 0x265   :  { %v335_v21 = vadd.f32 %v334_v20, %v240_v19  ;;  %v336_v22 = vpop.f32.mrb[3].mxu1 }
 0x266   :  { %v337_v23 = vadd.f32 %v336_v22, %v240_v19 }
 0x267   :  { %523 = vtanh.f32 %v335_v21 }
 0x268   :  { %525 = vtanh.f32 %v337_v23  ;;  %v340_v14 = vpop.f32.mrb[4].mxu1 }
 0x269   :  { %v342_v25 = vpop.f32.mrb[5].mxu1  ;;  %v341_v27 = vadd.f32 %v340_v14, %v245_v24 }
 0x26a   :  { %v343_v26 = vadd.f32 %v342_v25, %v245_v24 }
 0x26c   :  { %527 = vtanh.f32 %v343_v26 }
 0x26d   :  { %v520_v28 = vpop.eup %519  ;;  %529 = vtanh.f32 %v341_v27 }
 0x26e   :  { %v522_v29 = vpop.eup %521 }
 0x271   :  { %v524_v30 = vpop.eup %523 }
 0x272   :  { %v526_v31 = vpop.eup %525  ;;  %v488_v32 = vpack.c.bf16 %v524_v30, %v520_v28 }
 0x273   :  { %v486_v33 = vpack.c.bf16 %v526_v31, %v522_v29 }
 0x275   :  { %487 = vmatprep.subr.bf16.mxu0 %v486_v33 }
 0x276   :  { %v528_v34 = vpop.eup %527  ;;  %489 = vmatpush1.bf16.msra.mxu0 %v488_v32 }
 0x277   :  { %475 = vmatprep.subr.msk.mxu0 %vm130_vm0, %v528_v34  ;;  %v530_v36 = vpop.eup %529 }
 0x27a   :  { %476 = vmatpush1.msk.msra.mxu0 %vm130_vm0, %v530_v36 }
 0x27b   :  { %477 = vmatmul.mubr.msk.f32.vlgmr.msra.gmra.mrb[6].mxu0 %vm120_vm1, %v351_v35 }
 0x34e   :  { %v433_v38 = vpop.f32.mrb[6].mxu0 }
 0x34f   :  { %v434_v39 = vadd.f32 %v433_v38, %v356_v37  ;;  %v435_v40 = vpop.f32.mrb[7].mxu0 }
 0x350   :  { %v436_v41 = vadd.f32 %v435_v40, %v356_v37 }
 0x351   :  { %v438_v42 = vmul.f32 0.5, %v434_v39 }
 0x352   :  { %v439_v43 = vmul.f32 0.5, %v436_v41 }
 0x353   :  { %531 = vtanh.f32 %v438_v42 }
 0x354   :  { %533 = vtanh.f32 %v439_v43 }
 0x35d   :  { %v532_v44 = vpop.eup %531 }
 0x35e   :  { %v534_v45 = vpop.eup %533  ;;  %v442_v46 = vmul.f32 0.5, %v532_v44 }
 0x35f   :  { %v443_v47 = vmul.f32 0.5, %v534_v45 }
 0x360   :  { %v444_v48 = vadd.f32 0.5, %v442_v46 }
 0x361   :  { %v445_v49 = vadd.f32 0.5, %v443_v47 }
 0x363   :  { %v448_v50 = vcombine.low %v444_v48, %v445_v49 }
 0x365   :  { %450 = vst [vmem:[#allocation2] sm:$0x77] %v448_v50 }
 0x366   :  { %546 = shalt.err (!%p543_p4)
}
 0x367   :  { %s547_s26 = scalar_lea.hbm %s716_s9, 128 }
 0x368   :  { %p548_p5 = scmp.ne.s32.totalorder %s716_s9, %s547_s26  ;;  %p551_p6 = scmp.lt.u32.totalorder %s547_s26, %s716_s9 }
 0x36a   :  { %p553_p7 = pnand %p551_p6, %p548_p5 }
 0x36c   :  { %556 = shalt.err (!%p553_p7)
}
 0x36d   :  { %460 = dma.vmem_to_hbm [thread:$0]  %s458_s22, 128, %s716_s9, [#allocation3]  }
 0x36e   :  { %557 = dma.done.wait [#allocation3], 128  }
 0x36f   :  { %558 = vsyncadd [#allocation3], 4294967168 }
 0x370   :  { %464 = vsyncpa [#allocation3], 1 }

</bundles_post_ra>
